<compile_context>
chip_gen: v7x
topology: tpu7x:2x2x1
jax: 0.10.0
libtpu: 0.0.40
codegen_flags: <defaults>
</compile_context>

<pallas_src>
import functools

import jax
import jax.numpy as jnp
from jax import lax
from jax.experimental import pallas as pl
from jax.experimental.pallas import tpu as pltpu

PAD = 0
CHUNK = 8          # time-chunk for the prefix-bounded decoder attentions
NEG = -1e30        # finite "minus infinity" (keeps the online softmax NaN-free)


def _matT(x, w):
    """x @ w.T with fp32 accumulation (w stored PyTorch-style [out, in])."""
    return lax.dot_general(x, w, (((1,), (1,)), ((), ())),
                           preferred_element_type=jnp.float32)


def _dot(x, w):
    return jnp.dot(x, w, preferred_element_type=jnp.float32)


def _pick_row_tile(n):
    for cand in (512, 256, 128, 64, 32, 16, 8):
        if n % cand == 0:
            return cand
    return n


# ----------------------------- generic linear ------------------------------

def _linear_kernel(x_ref, w_ref, b_ref, o_ref):
    o_ref[...] = _matT(x_ref[...], w_ref[...]) + b_ref[...]


def pallas_linear(x, w, b=None):
    """x: [N, K], w: [M, K], b: [M] or None -> [N, M] (float32), row-tiled."""
    N, K = x.shape
    M = w.shape[0]
    if b is None:
        b = jnp.zeros((M,), jnp.float32)
    b2 = b.reshape(1, M)
    rt = _pick_row_tile(N)
    return pl.pallas_call(
        _linear_kernel,
        out_shape=jax.ShapeDtypeStruct((N, M), jnp.float32),
        grid=(N // rt,),
        in_specs=[pl.BlockSpec((rt, K), lambda i: (i, 0)),
                  pl.BlockSpec((M, K), lambda i: (0, 0)),
                  pl.BlockSpec((1, M), lambda i: (0, 0))],
        out_specs=pl.BlockSpec((rt, M), lambda i: (i, 0)),
        compiler_params=pltpu.CompilerParams(dimension_semantics=("parallel",)),
    )(x, w, b2)


# ----------------------------- encoder kernel ------------------------------

def _enc_rnn_kernel(gi_ref, mask_ref, whhT_ref, bhh_ref, out_ref, h_scr):
    # gi_ref: [1,B,3H] precomputed input gates (incl. b_ih) for this (dir, step)
    # mask_ref: [1,B,1] (1.0 = PAD -> carry hidden; emulates packed sequences)
    H = out_ref.shape[-1]

    @pl.when(pl.program_id(1) == 0)
    def _():
        h_scr[...] = jnp.zeros_like(h_scr)

    h = h_scr[...]
    gi = gi_ref[0]                                        # [B,3H]
    gh = _dot(h, whhT_ref[...]) + bhh_ref[...]            # fused 3-gate matmul
    r = jax.nn.sigmoid(gi[:, :H] + gh[:, :H])
    z = jax.nn.sigmoid(gi[:, H:2 * H] + gh[:, H:2 * H])
    n = jnp.tanh(gi[:, 2 * H:] + r * gh[:, 2 * H:])
    cand = (1.0 - z) * n + z * h
    h_new = jnp.where(mask_ref[0] > 0.5, h, cand)         # no update at PAD
    h_scr[...] = h_new
    out_ref[0] = h_new


def encoder_fused(p, src):
    B, S = src.shape
    ctx_mask = (src == PAD)                                           # [B,S]
    emb = jnp.take(p['enc_emb'], src, axis=0)                         # [B,S,I]
    I = emb.shape[-1]
    H = p['enc_whh_f'].shape[-1]

    # input-side gates for BOTH directions: single batched, row-tiled matmul
    wih_all = jnp.concatenate([p['enc_wih_f'], p['enc_wih_b']], 0)    # [6H,I]
    bih_all = jnp.concatenate([p['enc_bih_f'], p['enc_bih_b']], 0)
    gi = pallas_linear(emb.reshape(B * S, I), wih_all, bih_all)       # [B*S,6H]
    gi = gi.reshape(B, S, 2, 3 * H).transpose(2, 1, 0, 3)             # [2,S,B,3H]

    mask3 = ctx_mask.astype(jnp.float32).T[:, :, None]                # [S,B,1]
    whhT = jnp.stack([p['enc_whh_f'].T, p['enc_whh_b'].T], 0)         # [2,H,3H]
    bhh = jnp.stack([p['enc_bhh_f'].reshape(1, -1),
                     p['enc_bhh_b'].reshape(1, -1)], 0)               # [2,1,3H]

    def _pos(d, t):
        # forward direction reads/writes position t, backward reads/writes S-1-t
        return t + d * (S - 1 - 2 * t)

    states = pl.pallas_call(
        _enc_rnn_kernel,
        out_shape=jax.ShapeDtypeStruct((2, S, B, H), jnp.float32),
        grid=(2, S),
        in_specs=[
            pl.BlockSpec((None, 1, B, 3 * H), lambda d, t: (d, _pos(d, t), 0, 0)),
            pl.BlockSpec((1, B, 1), lambda d, t: (_pos(d, t), 0, 0)),
            pl.BlockSpec((None, H, 3 * H), lambda d, t: (d, 0, 0)),
            pl.BlockSpec((None, 1, 3 * H), lambda d, t: (d, 0, 0)),
        ],
        out_specs=pl.BlockSpec((None, 1, B, H), lambda d, t: (d, _pos(d, t), 0, 0)),
        scratch_shapes=[pltpu.VMEM((B, H), jnp.float32)],
        compiler_params=pltpu.CompilerParams(
            dimension_semantics=("parallel", "arbitrary")),
    )(gi, mask3, whhT, bhh)

    # both directions already in original time order (reversal lives in index maps)
    ctx_tm = jnp.concatenate([states[0], states[1]], axis=-1)         # [S,B,2H]
    return ctx_tm, ctx_mask


# ----------------------------- fused decoder -------------------------------

def _attend_full(qh, cache_ref, value_ref, mask_ref, v_row):
    """Bahdanau attention over the full (time-major) source context.

    qh [B,H]; cache_ref [S,B,H]; value_ref [S,B,Dv]; mask_ref [S,B,1]
    (1.0 = PAD); v_row [1,1,H] -> context [B,Dv].
    """
    e = jnp.tanh(qh[None, :, :] + cache_ref[...])
    logits = jnp.sum(e * v_row, axis=-1, keepdims=True)               # [S,B,1]
    logits = jnp.where(mask_ref[...] > 0.5, NEG, logits)
    m = jnp.max(logits, axis=0, keepdims=True)
    pw = jnp.exp(logits - m)
    pw = pw / (jnp.sum(pw, axis=0, keepdims=True) + 1e-30)
    return jnp.sum(pw * value_ref[...], axis=0)                       # [B,Dv]


def _attend_prefix(qh, cache_ref, value_ref, mask_ref, v_row, t):
    """Prefix-bounded (positions < t) Bahdanau attention, chunked online softmax."""
    Bb = value_ref.shape[1]
    Dv = value_ref.shape[2]
    n_chunks = (t + CHUNK - 1) // CHUNK

    def body(c, carry):
        m, s, acc = carry
        start = pl.multiple_of(c * CHUNK, CHUNK)
        keys = cache_ref[pl.ds(start, CHUNK)]                         # [CK,B,H]
        vals = value_ref[pl.ds(start, CHUNK)]                         # [CK,B,Dv]
        msk = mask_ref[pl.ds(start, CHUNK)]                           # [CK,B,1]
        pos = start + lax.broadcasted_iota(jnp.int32, (CHUNK, Bb, 1), 0)
        e = jnp.tanh(qh[None, :, :] + keys)
        logits = jnp.sum(e * v_row, axis=-1, keepdims=True)           # [CK,B,1]
        bad = jnp.logical_or(msk > 0.5, pos >= t)
        logits = jnp.where(bad, NEG, logits)
        m_new = jnp.maximum(m, jnp.max(logits, axis=0, keepdims=True))
        alpha = jnp.exp(m - m_new)
        pw = jnp.exp(logits - m_new)
        s_new = s * alpha + jnp.sum(pw, axis=0, keepdims=True)
        acc_new = acc * alpha[0] + jnp.sum(pw * vals, axis=0)
        return m_new, s_new, acc_new

    m0 = jnp.full((1, Bb, 1), NEG, jnp.float32)
    s0 = jnp.zeros((1, Bb, 1), jnp.float32)
    acc0 = jnp.zeros((Bb, Dv), jnp.float32)
    _, s, acc = lax.fori_loop(0, n_chunks, body, (m0, s0, acc0))
    return acc / (s[0] + 1e-30)                                       # [B,Dv]


def _decoder_kernel(ctx_ref, ctx_mask_ref, enc_cache_ref,
                    emb_ref, trg_mask_ref, emb_cache_ref, emb_lin_ref,
                    dec_init_ref, middle_out_ref,
                    wqT_ref, bq_ref, v_ref,
                    wo_encT_ref, wo_hidT_ref, wo_embT_ref, wo_preT_ref, wo_b_ref,
                    wihT_ref, whhT_ref, bih_ref, bhh_ref,
                    w_post_ref, b_post_ref,
                    out_ref,
                    hiddens_scr, hid_cache_scr, state_h_scr, state_e_scr):
    T = out_ref.shape[0]
    H = dec_init_ref.shape[-1]

    # ------ init (t = 0): dec_init == hiddens[0], middle_output == outputs[0] ------
    dec_init = dec_init_ref[...]
    hiddens_scr[...] = jnp.zeros_like(hiddens_scr)        # keep padded tail finite
    hid_cache_scr[...] = jnp.zeros_like(hid_cache_scr)
    hiddens_scr[0] = dec_init
    post0 = _dot(dec_init, w_post_ref[...]) + b_post_ref[...]
    hid_cache_scr[0] = post0[:, :H]
    state_h_scr[0] = dec_init
    state_h_scr[1] = dec_init
    e0 = emb_ref[0]
    state_e_scr[0] = e0
    state_e_scr[1] = e0
    out_ref[0] = middle_out_ref[...]

    def step(t, d):
        # d is COMPILE-TIME: 0 -> rnn_right (forward), 1 -> rnn_left (backward)
        hidden = state_h_scr[d]                                        # [B,H]
        pre_emb = state_e_scr[d]                                       # [B,I]

        # fused query projection for the 3 attentions (one [H,3H] matmul)
        qh = _dot(hidden, wqT_ref[...]) + bq_ref[...]
        q_enc, q_hid, q_emb = qh[:, :H], qh[:, H:2 * H], qh[:, 2 * H:]

        enc_ctx = _attend_full(q_enc, enc_cache_ref, ctx_ref, ctx_mask_ref,
                               v_ref[0:1])                             # [B,2H]
        hid_ctx = _attend_prefix(q_hid, hid_cache_scr, hiddens_scr,
                                 trg_mask_ref, v_ref[1:2], t)          # [B,H]
        emb_ctx = _attend_prefix(q_emb, emb_cache_ref, emb_ref,
                                 trg_mask_ref, v_ref[2:3], t)          # [B,I]

        # attn_output as 4 accumulating matmuls (no lane concat)
        # TODO(synk): on v5e/v6e (MRF) prefer concat + single matmul once dims
        # are 128-aligned; on v7x the MRB accumulates in place already.
        context = (_dot(enc_ctx, wo_encT_ref[...]) + _dot(hid_ctx, wo_hidT_ref[...])
                   + _dot(emb_ctx, wo_embT_ref[...]) + _dot(pre_emb, wo_preT_ref[...])
                   + wo_b_ref[...])                                    # [B,H]

        # GRU cell: gate-fused [H,3H] matmuls, static direction index
        gi = _dot(context, wihT_ref[d]) + bih_ref[d]                   # [B,3H]
        gh = _dot(hidden, whhT_ref[d]) + bhh_ref[d]                    # [B,3H]
        r = jax.nn.sigmoid(gi[:, :H] + gh[:, :H])
        z = jax.nn.sigmoid(gi[:, H:2 * H] + gh[:, H:2 * H])
        n = jnp.tanh(gi[:, 2 * H:] + r * gh[:, 2 * H:])
        h_new = (1.0 - z) * n + z * hidden

        # incremental state / key-cache / output update (O(T) total)
        state_h_scr[d] = h_new
        state_e_scr[d] = emb_ref[t]
        hiddens_scr[t] = h_new
        post = _dot(h_new, w_post_ref[...]) + b_post_ref[...]          # hid_wk + lin_out fused
        hid_cache_scr[t] = post[:, :H]
        out_ref[t] = post[:, H:] + emb_lin_ref[t - 1]

    # ------ steps t = 1 .. T-1, unrolled by 2 (right step + left step) ------
    n_pairs = (T - 1) // 2

    @pl.loop(0, n_pairs)
    def _(pi):
        t0 = 1 + 2 * pi
        step(t0, 0)        # rnn_right
        step(t0 + 1, 1)    # rnn_left

    if (T - 1) % 2 == 1:   # static tail (T is odd by construction, so unused)
        step(T - 1, 0)


def decoder_fused(p, ctx_tm, ctx_mask, emb_tm, trg_mask_tm, dec_init,
                  middle_output, enc_cache_tm, emb_cache_tm, emb_lin_tm):
    S, B, C = ctx_tm.shape
    T, _, I = emb_tm.shape
    H = dec_init.shape[-1]
    T_pad = ((T + CHUNK - 1) // CHUNK) * CHUNK

    # batch block: shard across TensorCores (v7x megacore) when B is big enough
    bb = B // 2 if (B % 16 == 0) else B

    ctx_mask3 = ctx_mask.astype(jnp.float32).T[:, :, None]             # [S,B,1]
    trg_mask3 = trg_mask_tm.astype(jnp.float32)[:, :, None]            # [T,B,1]
    pad_t = ((0, T_pad - T), (0, 0), (0, 0))
    emb_pad = jnp.pad(emb_tm, pad_t)
    emb_cache_pad = jnp.pad(emb_cache_tm, pad_t)
    trg_mask_pad = jnp.pad(trg_mask3, pad_t, constant_values=1.0)

    # fused / pre-transposed weights
    wqT = jnp.concatenate([p['enc_attn_wq'], p['hid_attn_wq'],
                           p['emb_attn_wq']], 0).T                     # [H,3H]
    bq = jnp.concatenate([p['enc_attn_bq'], p['hid_attn_bq'],
                          p['emb_attn_bq']], 0).reshape(1, -1)
    v_all = jnp.stack([p['enc_attn_v'], p['hid_attn_v'],
                       p['emb_attn_v']], 0)[:, None, :]                # [3,1,H]
    # NOTE: scalar attention logit bias `bl` is softmax-invariant and dropped.
    wo = p['attn_out_w']                                               # [H, C+H+2I]
    wo_encT = wo[:, :C].T
    wo_hidT = wo[:, C:C + H].T
    wo_embT = wo[:, C + H:C + H + I].T
    wo_preT = wo[:, C + H + I:].T
    wo_b = p['attn_out_b'].reshape(1, -1)
    wihT = jnp.stack([p['rnn_right_wih'].T, p['rnn_left_wih'].T], 0)   # [2,H,3H]
    whhT = jnp.stack([p['rnn_right_whh'].T, p['rnn_left_whh'].T], 0)
    bih = jnp.stack([p['rnn_right_bih'].reshape(1, -1),
                     p['rnn_left_bih'].reshape(1, -1)], 0)             # [2,1,3H]
    bhh = jnp.stack([p['rnn_right_bhh'].reshape(1, -1),
                     p['rnn_left_bhh'].reshape(1, -1)], 0)
    w_post = jnp.concatenate([p['hid_attn_wk'].T, p['lin_out_w'].T], 1)  # [H,H+I]
    b_post = jnp.concatenate([p['hid_attn_bk'], p['lin_out_b']], 0).reshape(1, -1)

    args = [ctx_tm, ctx_mask3, enc_cache_tm,
            emb_pad, trg_mask_pad, emb_cache_pad, emb_lin_tm,
            dec_init, middle_output,
            wqT, bq, v_all,
            wo_encT, wo_hidT, wo_embT, wo_preT, wo_b,
            wihT, whhT, bih, bhh,
            w_post, b_post]

    def b3(sz0, sz2):
        return pl.BlockSpec((sz0, bb, sz2), lambda b: (0, b, 0))

    def full2(a):
        return pl.BlockSpec(a.shape, lambda b: (0, 0))

    def full3(a):
        return pl.BlockSpec(a.shape, lambda b: (0, 0, 0))

    in_specs = [
        b3(S, C), b3(S, 1), b3(S, H),
        b3(T_pad, I), b3(T_pad, 1), b3(T_pad, H),
        b3(T, I),
        pl.BlockSpec((bb, H), lambda b: (b, 0)),
        pl.BlockSpec((bb, I), lambda b: (b, 0)),
        full2(wqT), full2(bq), full3(v_all),
        full2(wo_encT), full2(wo_hidT), full2(wo_embT), full2(wo_preT), full2(wo_b),
        full3(wihT), full3(whhT), full3(bih), full3(bhh),
        full2(w_post), full2(b_post),
    ]

    out_tm = pl.pallas_call(
        _decoder_kernel,
        out_shape=jax.ShapeDtypeStruct((T, B, I), jnp.float32),
        grid=(B // bb,),
        in_specs=in_specs,
        out_specs=pl.BlockSpec((T, bb, I), lambda b: (0, b, 0)),
        scratch_shapes=[pltpu.VMEM((T_pad, bb, H), jnp.float32),   # hiddens
                        pltpu.VMEM((T_pad, bb, H), jnp.float32),   # hid key cache
                        pltpu.VMEM((2, bb, H), jnp.float32),       # fwd/bwd hidden
                        pltpu.VMEM((2, bb, I), jnp.float32)],      # fwd/bwd pre_emb
        compiler_params=pltpu.CompilerParams(dimension_semantics=("parallel",)),
    )(*args)
    return out_tm.transpose(1, 0, 2)                                # [B,T,I]


# ----------------------------- generator -----------------------------------

def _generator_kernel(x_ref, w_ref, logits_ref, lse_ref, m_scr, s_scr, *, pad_idx):
    j = pl.program_id(1)
    vt = w_ref.shape[0]

    @pl.when(j == 0)
    def _():
        m_scr[...] = jnp.full_like(m_scr, NEG)
        s_scr[...] = jnp.zeros_like(s_scr)

    logits = _matT(x_ref[...], w_ref[...])                           # [rt,vt]
    col = j * vt + lax.broadcasted_iota(jnp.int32, logits.shape, 1)
    logits = jnp.where(col == pad_idx, -jnp.inf, logits)             # _pad_2d
    logits_ref[...] = logits

    m_prev = m_scr[...]
    m_new = jnp.maximum(m_prev, jnp.max(logits, axis=-1, keepdims=True))
    s_scr[...] = (s_scr[...] * jnp.exp(m_prev - m_new)
                  + jnp.sum(jnp.exp(logits - m_new), axis=-1, keepdims=True))
    m_scr[...] = m_new

    @pl.when(j == pl.num_programs(1) - 1)
    def _():
        lse_ref[...] = m_scr[...] + jnp.log(s_scr[...])


def pallas_generator(x3d, w_proj, pad_idx=PAD):
    """x3d [B,T,I], w_proj [V,I] -> log-probs [B,T,V] (PAD column = -inf)."""
    B, T, I = x3d.shape
    V = w_proj.shape[0]
    rows = B * T
    x2d = x3d.reshape(rows, I)
    rt = _pick_row_tile(rows)
    vt = V
    for cand in (4096, 2048, 1024, 512, 256, 128):
        if V % cand == 0:
            vt = cand
            break
    logits, lse = pl.pallas_call(
        functools.partial(_generator_kernel, pad_idx=pad_idx),
        out_shape=(jax.ShapeDtypeStruct((rows, V), jnp.float32),
                   jax.ShapeDtypeStruct((rows, 1), jnp.float32)),
        grid=(rows // rt, V // vt),
        in_specs=[pl.BlockSpec((rt, I), lambda i, j: (i, 0)),
                  pl.BlockSpec((vt, I), lambda i, j: (j, 0))],
        out_specs=(pl.BlockSpec((rt, vt), lambda i, j: (i, j)),
                   pl.BlockSpec((rt, 1), lambda i, j: (i, 0))),
        scratch_shapes=[pltpu.VMEM((rt, 1), jnp.float32),
                        pltpu.VMEM((rt, 1), jnp.float32)],
        compiler_params=pltpu.CompilerParams(
            dimension_semantics=("parallel", "arbitrary")),
    )(x2d, w_proj)
    # TODO(synk): fold the lse subtraction into a second in-kernel pass to avoid
    # this extra [rows,V] HBM round trip; cast gen_w to bf16 at production sizes.
    return (logits - lse).reshape(B, T, V)


# ----------------------------- parameters ----------------------------------

def init_params(key, n_src_vocab, n_tgt_vocab, d_word_vec, d_model):
    I, H = d_word_vec, d_model
    C = 2 * H  # context_size
    keys = iter(jax.random.split(key, 80))

    def w(shape, scale=0.1):
        return scale * jax.random.normal(next(keys), shape, jnp.float32)

    p = {}
    # Encoder
    p['enc_emb'] = w((n_src_vocab, I), 0.05)
    for d in ('f', 'b'):
        p[f'enc_wih_{d}'] = w((3 * H, I))
        p[f'enc_whh_{d}'] = w((3 * H, H))
        p[f'enc_bih_{d}'] = w((3 * H,))
        p[f'enc_bhh_{d}'] = w((3 * H,))
    # Decoder
    p['dec_emb'] = w((n_tgt_vocab, I), 0.05)
    p['bridge_w'] = w((H, C)); p['bridge_b'] = w((H,))
    p['mc_w'] = w((I, C));     p['mc_b'] = w((I,))            # middle_classifier
    for name, ksz in (('enc_attn', C), ('hid_attn', H), ('emb_attn', I)):
        p[f'{name}_wk'] = w((H, ksz)); p[f'{name}_bk'] = w((H,))
        p[f'{name}_wq'] = w((H, H));   p[f'{name}_bq'] = w((H,))
        p[f'{name}_v'] = w((H,));      p[f'{name}_bl'] = w((1,))
    p['attn_out_w'] = w((H, 4 * H)); p['attn_out_b'] = w((H,))
    for d in ('right', 'left'):
        p[f'rnn_{d}_wih'] = w((3 * H, H))
        p[f'rnn_{d}_whh'] = w((3 * H, H))
        p[f'rnn_{d}_bih'] = w((3 * H,))
        p[f'rnn_{d}_bhh'] = w((3 * H,))
    p['lin_out_w'] = w((I, H)); p['lin_out_b'] = w((I,))
    p['lin_emb_w'] = w((I, I)); p['lin_emb_b'] = w((I,))
    p['gen_w'] = w((n_tgt_vocab, I), 0.05)                    # Generator.proj (no bias)
    return p


# ----------------------------- model glue ----------------------------------

def init_decoder_when_train(p, ctx_tm, ctx_mask, trg, y_len):
    S, B, C = ctx_tm.shape
    H = p['bridge_w'].shape[0]
    I = p['mc_w'].shape[0]

    no_pad = 1.0 - ctx_mask.astype(jnp.float32)               # [B,S]
    no_pad_tm = no_pad.T[:, :, None]                          # [S,B,1]
    ctx_mean = (ctx_tm * no_pad_tm).sum(0) / no_pad_tm.sum(0)  # [B,C]

    # fused bridge + middle_classifier (both consume ctx_mean)
    w_bm = jnp.concatenate([p['bridge_w'], p['mc_w']], 0)
    b_bm = jnp.concatenate([p['bridge_b'], p['mc_b']], 0)
    bm = pallas_linear(ctx_mean, w_bm, b_bm)
    dec_init = jnp.tanh(bm[:, :H])
    # TODO(synk): source get_middle_word calls self.enc_attn() with NO arguments
    # (not runnable as written); we substitute the mean-pooled encoder context.
    middle_output = jnp.tanh(bm[:, H:])

    enc_cache_tm = pallas_linear(ctx_tm.reshape(S * B, C),
                                 p['enc_attn_wk'], p['enc_attn_bk']).reshape(S, B, H)

    middle_index = [1] * B
    middle_words = trg[:, 1]

    # sorted_trg construction (y_len static Python ints; mirrors pad_sequence)
    left_seqs = [trg[i, :middle_index[i]][::-1] for i in range(B)]
    right_seqs = [trg[i, middle_index[i] + 1:y_len[i] + 2] for i in range(B)]
    left_len = max(s.shape[0] for s in left_seqs)
    right_len = max(s.shape[0] for s in right_seqs)

    def pad_to(s, L):
        if s.shape[0] < L:
            return jnp.concatenate([s, jnp.full((L - s.shape[0],), PAD, s.dtype)])
        return s

    left_trg = jnp.stack([pad_to(s, left_len) for s in left_seqs])
    right_trg = jnp.stack([pad_to(s, right_len) for s in right_seqs])
    pad_col = jnp.full((B,), PAD, trg.dtype)
    sorted_list = [middle_words]
    for i in range(max(left_len, right_len)):
        sorted_list.append(right_trg[:, i] if i < right_len else pad_col)
        sorted_list.append(left_trg[:, i] if i < left_len else pad_col)
    sorted_trg = jnp.stack(sorted_list, axis=-1)              # [B,T]
    T = sorted_trg.shape[1]

    sorted_trg_tm = sorted_trg.T                              # [T,B]
    emb_tm = jnp.take(p['dec_emb'], sorted_trg_tm, axis=0)    # [T,B,I]
    # fused emb_attn key-cache + linear_emb projection (same [T*B,I] input)
    w_ce = jnp.concatenate([p['emb_attn_wk'], p['lin_emb_w']], 0)
    b_ce = jnp.concatenate([p['emb_attn_bk'], p['lin_emb_b']], 0)
    ce = pallas_linear(emb_tm.reshape(T * B, I), w_ce, b_ce)
    emb_cache_tm = ce[:, :H].reshape(T, B, H)
    emb_lin_tm = ce[:, H:].reshape(T, B, I)

    trg_mask_tm = (sorted_trg_tm == PAD)
    return (emb_tm, dec_init, middle_output, sorted_trg,
            enc_cache_tm, emb_cache_tm, emb_lin_tm, trg_mask_tm)


def middle_forward(p, src, trg, y_len):
    ctx_tm, ctx_mask = encoder_fused(p, src)
    (emb_tm, dec_init, middle_output, sorted_trg, enc_cache_tm,
     emb_cache_tm, emb_lin_tm, trg_mask_tm) = init_decoder_when_train(
        p, ctx_tm, ctx_mask, trg, y_len)
    dec_out = decoder_fused(p, ctx_tm, ctx_mask, emb_tm, trg_mask_tm, dec_init,
                            middle_output, enc_cache_tm, emb_cache_tm, emb_lin_tm)
    log_probs = pallas_generator(dec_out, p['gen_w'], PAD)    # [B,T,V]
    return log_probs, sorted_trg


# --------------------------------- main -------------------------------------

if __name__ == "__main__":
    key = jax.random.PRNGKey(0)
    kp, ks, kt = jax.random.split(key, 3)

    n_src_vocab, n_tgt_vocab = 32, 32
    d_word_vec, d_model = 16, 32          # input_size must equal d_model/2 (attn_output = 4*H)
    B, S_src, S_trg = 2, 8, 8
    y_len = [6, 6]

    params = init_params(kp, n_src_vocab, n_tgt_vocab, d_word_vec, d_model)
    src = jax.random.randint(ks, (B, S_src), 3, n_src_vocab, dtype=jnp.int32)
    trg = jax.random.randint(kt, (B, S_trg), 3, n_tgt_vocab, dtype=jnp.int32)

    out, sorted_trg = middle_forward(params, src, trg, y_len)
    jax.block_until_ready(out)
    jax.block_until_ready(sorted_trg)

    assert out.shape == (B, sorted_trg.shape[1], n_tgt_vocab), out.shape
    assert bool(jnp.isfinite(out[:, :, 1:]).all())
    print("KERNEL_OK")
</pallas_src>

<mosaic_0001>
module attributes {stable_mosaic.version = 11 : i64} {
  func.func @_linear_kernel(%arg0: i32, %arg1: memref<16x16xf32, #tpu.memory_space<vmem>>, %arg2: memref<192x16xf32, #tpu.memory_space<vmem>>, %arg3: memref<1x192xf32, #tpu.memory_space<vmem>>, %arg4: memref<16x192xf32, #tpu.memory_space<vmem>>) attributes {dimension_semantics = [#tpu.dimension_semantics<parallel>], iteration_bounds = array<i64: 1>, scalar_prefetch = 0 : i64, scratch_operands = 0 : i64, tpu.core_type = #tpu.core_type<tc>, window_params = [{transform_indices = @transform_0, window_bounds = array<i64: 16, 16>}, {pipeline_mode = #tpu.pipeline_mode<synchronous>, transform_indices = @transform_1, window_bounds = array<i64: 192, 16>}, {pipeline_mode = #tpu.pipeline_mode<synchronous>, transform_indices = @transform_2, window_bounds = array<i64: 1, 192>}, {transform_indices = @transform_3, window_bounds = array<i64: 16, 192>}]} {
    %c0 = arith.constant 0 : index
    %c0_0 = arith.constant 0 : index
    %0 = vector.load %arg1[%c0, %c0_0] : memref<16x16xf32, #tpu.memory_space<vmem>>, vector<16x16xf32>
    %c0_1 = arith.constant 0 : index
    %c0_2 = arith.constant 0 : index
    %1 = vector.load %arg2[%c0_1, %c0_2] : memref<192x16xf32, #tpu.memory_space<vmem>>, vector<192x16xf32>
    %cst = arith.constant dense<0.000000e+00> : vector<16x192xf32>
    %2 = tpu.matmul %0, %1, %cst {dimension_numbers = #tpu.dot_dimension_numbers<[1], [1], [0], [0], [0, 0, 1, 0], [], []>} : vector<16x16xf32>, vector<192x16xf32>, vector<16x192xf32> -> vector<16x192xf32>
    %c0_3 = arith.constant 0 : index
    %c0_4 = arith.constant 0 : index
    %3 = vector.load %arg3[%c0_3, %c0_4] : memref<1x192xf32, #tpu.memory_space<vmem>>, vector<1x192xf32>
    %4 = vector.broadcast %3 : vector<1x192xf32> to vector<16x192xf32>
    %5 = arith.addf %2, %4 : vector<16x192xf32>
    %c0_5 = arith.constant 0 : index
    %c0_6 = arith.constant 0 : index
    %6 = vector.load %arg4[%c0_5, %c0_6] : memref<16x192xf32, #tpu.memory_space<vmem>>, vector<16x192xf32>
    tpu.vector_store %arg4[%c0_5, %c0_6], %5 {strides = array<i32>} : memref<16x192xf32, #tpu.memory_space<vmem>>, vector<16x192xf32>,
    return
  }
  func.func @transform_0(%arg0: i32) -> (i32, i32) {
    %c0_i32 = arith.constant 0 : i32
    %c0_i32_0 = arith.constant 0 : i32
    return %arg0, %c0_i32 : i32, i32
  }
  func.func @transform_1(%arg0: i32) -> (i32, i32) {
    %c0_i32 = arith.constant 0 : i32
    %c0_i32_0 = arith.constant 0 : i32
    %c0_i32_1 = arith.constant 0 : i32
    return %c0_i32, %c0_i32_0 : i32, i32
  }
  func.func @transform_2(%arg0: i32) -> (i32, i32) {
    %c0_i32 = arith.constant 0 : i32
    %c0_i32_0 = arith.constant 0 : i32
    %c0_i32_1 = arith.constant 0 : i32
    return %c0_i32, %c0_i32_0 : i32, i32
  }
  func.func @transform_3(%arg0: i32) -> (i32, i32) {
    %c0_i32 = arith.constant 0 : i32
    %c0_i32_0 = arith.constant 0 : i32
    return %arg0, %c0_i32 : i32, i32
  }
}

</mosaic_0001>

<bundles_post_ra>
// kernel: tpu_custom_call.1
= control target key start
LH: loop header
LB: loop body
LE: loop exit
PB: predicated region body
PF: predicated region fallthrough
CT: control target
= control target key end

     0   :  { %vm53_vm0 = vcmask 130048   ;;  %v357_v2 = vmov 0.0|0.0   ;;  %v358_v5 = vmov 0.0   ;;  %s555_s0 = inlined_call_operand.vmem [shape: f32[16,16], index: 0, kind: input, shape index: {}]   ;;  %s556_s1 = inlined_call_operand.vmem [shape: f32[192,16], index: 1, kind: input, shape index: {}]   ;;  %s557_s2 = inlined_call_operand.vmem [shape: f32[1,192], index: 2, kind: input, shape index: {}]   ;;  %s558_s3 = inlined_call_operand.hbm [shape: f32[16,192], index: 3, kind: output, shape index: {}]  }
   0x1   :  { %v17_v0 = vld [vmem:[%s556_s1] sm:$0xff]  ;;  %v18_v1 = vld [vmem:[%s556_s1 + $0x8] sm:$0xff]  ;;  %256 = vmatprep.subr.bf16.mxu0 %v357_v2  ;;  %304 = vmatprep.subr.bf16.mxu1 %v357_v2  ;;  %vm392_vm1 = vmpackc.low %vm53_vm0, %vm53_vm0 }
   0x2   :  { %v257_v3 = vpack.c.bf16 %v18_v1, %v17_v0  ;;  %196 = vmatprep.mubr.f32.mxu0 %v358_v5  ;;  %202 = vmatprep.mubr.f32.mxu1 %v358_v5  ;;  %v19_v6 = vld [vmem:[%s556_s1 + $0x10] sm:$0xff]  ;;  %v20_v7 = vld [vmem:[%s556_s1 + $0x18] sm:$0xff] }
   0x3   :  { %v261_v8 = vpack.c.bf16 %v20_v7, %v19_v6 }
   0x4   :  { %259 = vmatpush1.bf16.xpose.msk.msra.mxu0 %vm392_vm1, %v257_v3  ;;  %316 = vmatpush1.bf16.xpose.msk.msra.mxu1 %vm392_vm1, %v257_v3 }
   0x5   :  { %260 = vmatprep.subr.bf16.mxu0 %v357_v2  ;;  %305 = vmatprep.subr.bf16.mxu1 %v357_v2 }
   0x6   :  { %8 = vsyncpa [#allocation3], 0  ;;  %v21_v9 = vld [vmem:[%s556_s1 + $0x20] sm:$0xff]  ;;  %v22_v10 = vld [vmem:[%s556_s1 + $0x28] sm:$0xff]  ;;  %v43_v41 = vlaneseq  ;;  %s359_s11 = smov [#allocation2]   ;;  %vm210_vm2 = vcmask 523264  }
   0x7   :  { %v265_v11 = vpack.c.bf16 %v22_v10, %v21_v9  ;;  %v23_v12 = vld [vmem:[%s556_s1 + $0x30] sm:$0xff]  ;;  %v24_v13 = vld [vmem:[%s556_s1 + $0x38] sm:$0xff]  ;;  %v25_v15 = vld [vmem:[%s556_s1 + $0x40] sm:$0xff]  ;;  %s219_s12 = sshll.u32 %s359_s11, 4  ;;  %s220_s12 = int_to_ptr.vmem [resolvable:$true] %s219_s12 }
   0x8   :  { %v269_v14 = vpack.c.bf16 %v24_v13, %v23_v12  ;;  %v26_v16 = vld [vmem:[%s556_s1 + $0x48] sm:$0xff]  ;;  %v27_v18 = vld [vmem:[%s556_s1 + $0x50] sm:$0xff]  ;;  %v28_v19 = vld [vmem:[%s556_s1 + $0x58] sm:$0xff]  ;;  %v44_v42 = vshrl.u32 %v43_v41, 7  ;;  %p338_p1 = scmp.lt.s32.totalorder %s220_s12, %s220_s12 }
   0x9   :  { %v273_v17 = vpack.c.bf16 %v26_v16, %v25_v15  ;;  %v277_v20 = vpack.c.bf16 %v28_v19, %v27_v18  ;;  %v29_v21 = vld [vmem:[%s556_s1 + $0x60] sm:$0xff]  ;;  %v30_v22 = vld [vmem:[%s556_s1 + $0x68] sm:$0xff]  ;;  %v31_v24 = vld [vmem:[%s556_s1 + $0x70] sm:$0xff] }
   0xa   :  { %v281_v23 = vpack.c.bf16 %v30_v22, %v29_v21  ;;  %v32_v25 = vld [vmem:[%s556_s1 + $0x78] sm:$0xff]  ;;  %v33_v27 = vld [vmem:[%s556_s1 + $0x80] sm:$0xff]  ;;  %v34_v28 = vld [vmem:[%s556_s1 + $0x88] sm:$0xff]  ;;  %v45_v43 = vsub.s32 0, %v44_v42  ;;  %v49_v45 = vsub.s32 1, %v44_v42 }
   0xb   :  { %v285_v26 = vpack.c.bf16 %v32_v25, %v31_v24  ;;  %v289_v29 = vpack.c.bf16 %v34_v28, %v33_v27  ;;  %v35_v30 = vld [vmem:[%s556_s1 + $0x90] sm:$0xff]  ;;  %v36_v31 = vld [vmem:[%s556_s1 + $0x98] sm:$0xff]  ;;  %v37_v33 = vld [vmem:[%s556_s1 + $0xa0] sm:$0xff] }
   0xc   :  { %263 = vmatpush1.bf16.xpose.msk.msra.mxu0 %vm392_vm1, %v261_v8  ;;  %317 = vmatpush1.bf16.xpose.msk.msra.mxu1 %vm392_vm1, %v261_v8  ;;  %v293_v32 = vpack.c.bf16 %v36_v31, %v35_v30  ;;  %v38_v34 = vld [vmem:[%s556_s1 + $0xa8] sm:$0xff]  ;;  %v39_v36 = vld [vmem:[%s556_s1 + $0xb0] sm:$0xff]  ;;  %v40_v37 = vld [vmem:[%s556_s1 + $0xb8] sm:$0xff] }
   0xd   :  { %264 = vmatprep.subr.bf16.mxu0 %v357_v2  ;;  %306 = vmatprep.subr.bf16.mxu1 %v357_v2  ;;  %v297_v35 = vpack.c.bf16 %v38_v34, %v37_v33  ;;  %v301_v38 = vpack.c.bf16 %v40_v37, %v39_v36  ;;  %v15_v39 = vld [vmem:[%s555_s0] sm:$0xff]  ;;  %v16_v40 = vld [vmem:[%s555_s0 + $0x8] sm:$0xff]  ;;  %s333_s0 = scalar_lea.vmem %s220_s12, 512 }
   0xe   :  { %v41_v44 = vld [vmem:[%s557_s2] sm:$0x3]  ;;  %p334_p0 = scmp.ne.s32.totalorder %s220_s12, %s333_s0  ;;  %p339_p2 = scmp.lt.s32.totalorder %s333_s0, %s333_s0 }
   0xf   :  { %v46_v46 = vrot.slane %v41_v44, %v45_v43  ;;  %v50_v47 = vrot.slane %v41_v44, %v49_v45 }
  0x10   :  { %p340_p3 = por %p339_p2, %p338_p1 }
  0x12   :  { %p341_p4 = pnand %p340_p3, %p334_p0 }
  0x14   :  { %267 = vmatpush1.bf16.xpose.msk.msra.mxu0 %vm392_vm1, %v265_v11  ;;  %318 = vmatpush1.bf16.xpose.msk.msra.mxu1 %vm392_vm1, %v265_v11 }
  0x15   :  { %268 = vmatprep.subr.bf16.mxu0 %v357_v2  ;;  %307 = vmatprep.subr.bf16.mxu1 %v357_v2 }
  0x1c   :  { %271 = vmatpush1.bf16.xpose.msk.msra.mxu0 %vm392_vm1, %v269_v14  ;;  %319 = vmatpush1.bf16.xpose.msk.msra.mxu1 %vm392_vm1, %v269_v14 }
  0x1d   :  { %272 = vmatprep.subr.bf16.mxu0 %v357_v2  ;;  %308 = vmatprep.subr.bf16.mxu1 %v357_v2 }
  0x24   :  { %275 = vmatpush1.bf16.xpose.msk.msra.mxu0 %vm392_vm1, %v273_v17  ;;  %320 = vmatpush1.bf16.xpose.msk.msra.mxu1 %vm392_vm1, %v273_v17 }
  0x25   :  { %276 = vmatprep.subr.bf16.mxu0 %v357_v2  ;;  %309 = vmatprep.subr.bf16.mxu1 %v357_v2 }
  0x2c   :  { %279 = vmatpush1.bf16.xpose.msk.msra.mxu0 %vm392_vm1, %v277_v20  ;;  %321 = vmatpush1.bf16.xpose.msk.msra.mxu1 %vm392_vm1, %v277_v20 }
  0x2d   :  { %280 = vmatprep.subr.bf16.mxu0 %v357_v2  ;;  %310 = vmatprep.subr.bf16.mxu1 %v357_v2 }
  0x34   :  { %283 = vmatpush1.bf16.xpose.msk.msra.mxu0 %vm392_vm1, %v281_v23  ;;  %322 = vmatpush1.bf16.xpose.msk.msra.mxu1 %vm392_vm1, %v281_v23 }
  0x35   :  { %284 = vmatprep.subr.bf16.mxu0 %v357_v2  ;;  %311 = vmatprep.subr.bf16.mxu1 %v357_v2 }
  0x3c   :  { %287 = vmatpush1.bf16.xpose.msk.msra.mxu0 %vm392_vm1, %v285_v26  ;;  %323 = vmatpush1.bf16.xpose.msk.msra.mxu1 %vm392_vm1, %v285_v26 }
  0x3d   :  { %288 = vmatprep.subr.bf16.mxu0 %v357_v2  ;;  %312 = vmatprep.subr.bf16.mxu1 %v357_v2 }
  0x44   :  { %291 = vmatpush1.bf16.xpose.msk.msra.mxu0 %vm392_vm1, %v289_v29  ;;  %324 = vmatpush1.bf16.xpose.msk.msra.mxu1 %vm392_vm1, %v289_v29 }
  0x45   :  { %292 = vmatprep.subr.bf16.mxu0 %v357_v2  ;;  %313 = vmatprep.subr.bf16.mxu1 %v357_v2 }
  0x4c   :  { %295 = vmatpush1.bf16.xpose.msk.msra.mxu0 %vm392_vm1, %v293_v32  ;;  %325 = vmatpush1.bf16.xpose.msk.msra.mxu1 %vm392_vm1, %v293_v32 }
  0x4d   :  { %296 = vmatprep.subr.bf16.mxu0 %v357_v2  ;;  %314 = vmatprep.subr.bf16.mxu1 %v357_v2 }
  0x54   :  { %299 = vmatpush1.bf16.xpose.msk.msra.mxu0 %vm392_vm1, %v297_v35  ;;  %326 = vmatpush1.bf16.xpose.msk.msra.mxu1 %vm392_vm1, %v297_v35 }
  0x55   :  { %300 = vmatprep.subr.bf16.mxu0 %v357_v2  ;;  %315 = vmatprep.subr.bf16.mxu1 %v357_v2 }
  0x5c   :  { %303 = vmatpush1.bf16.xpose.msk.msra.mxu0 %vm392_vm1, %v301_v38  ;;  %327 = vmatpush1.bf16.xpose.msk.msra.mxu1 %vm392_vm1, %v301_v38 }
  0x63   :  { %254 = vmatmul.mubr.msk.f32.vlgmr.msra.gmra.mrb[0].mxu0 %vm53_vm0, %v15_v39  ;;  %255 = vmatmul.mubr.msk.f32.vlgmr.msra.gmra.mrb[0].mxu1 %vm53_vm0, %v16_v40 }
 0x136   :  { %v198_v48 = vpop.f32.mrb[0].mxu0  ;;  %v204_v49 = vpop.f32.mrb[0].mxu1 }
 0x137   :  { %v199_v50 = vadd.f32 %v198_v48, %v46_v46  ;;  %v205_v51 = vadd.f32 %v204_v49, %v46_v46  ;;  %v200_v52 = vpop.f32.mrb[1].mxu0  ;;  %v206_v53 = vpop.f32.mrb[1].mxu1 }
 0x138   :  { %v201_v54 = vadd.f32 %v200_v52, %v50_v47  ;;  %v207_v55 = vadd.f32 %v206_v53, %v50_v47 }
 0x139   :  { %209 = vst [vmem:[#allocation2] sm:$0xff] %v199_v50  ;;  %212 = vst [vmem:[#allocation2 + $0x10] sm:$0xff] %v205_v51 }
 0x13a   :  { %211 = vst.msk [vmem:[#allocation2 + $0x8] sm:$0xff] %vm210_vm2, %v201_v54  ;;  %213 = vst.msk [vmem:[#allocation2 + $0x18] sm:$0xff] %vm210_vm2, %v207_v55 }
 0x13b   :  { %344 = shalt.err (!%p341_p4)
}
 0x13c   :  { %s345_s14 = scalar_lea.hbm %s558_s3, 512 }
 0x13d   :  { %p346_p5 = scmp.ne.s32.totalorder %s558_s3, %s345_s14  ;;  %p349_p6 = scmp.lt.u32.totalorder %s345_s14, %s558_s3 }
 0x13f   :  { %p351_p7 = pnand %p349_p6, %p346_p5 }
 0x141   :  { %354 = shalt.err (!%p351_p7)
}
 0x142   :  { %s360_s19 = smov 256   ;;  %s361_s20 = smov 16  }
 0x143   :  { %225 = dma.vmem_to_hbm [thread:$0]  %s220_s12, 512, %s558_s3, [#allocation3], %s360_s19, %s360_s19, %s361_s20  }
 0x144   :  { %355 = dma.done.wait [#allocation3], 512  }
 0x145   :  { %356 = vsyncadd [#allocation3], 4294966784 }
 0x146   :  { %229 = vsyncpa [#allocation3], 1 }

</bundles_post_ra>
